<compile_context>
chip_gen: v6e
topology: v6e:2x2x1
jax: 0.10.0
libtpu: 0.0.40
codegen_flags: <defaults>
</compile_context>

<pallas_src>
import functools

import jax
import jax.numpy as jnp
from jax.experimental import pallas as pl
from jax.experimental.pallas import tpu as pltpu


# --------------------------------------------------------------------------
# Hot kernel: broadcast-multiply-store over coarse batch blocks
# --------------------------------------------------------------------------
def scale_kernel(x_ref, cum_ref, out_ref):
    # x_ref  : (Bblk, 1, D)  input rows (singleton time axis -> free broadcast)
    # cum_ref: (T, D)        cumulative damping factors (compute dtype)
    # out_ref: (Bblk, T, D)  damped, repeated output
    out_ref[...] = (x_ref[...] * cum_ref[...][None, :, :]).astype(out_ref.dtype)


def _vmem_plan():
    """Per-chip (output-tile byte budget, scoped VMEM limit)."""
    cap = None
    try:
        cap = getattr(pltpu.get_tpu_info(), "vmem_capacity_bytes", None)
    except Exception:
        cap = None
    if cap is not None and cap >= (96 << 20):
        # v5e / v6e: 128 MiB physical VMEM -> larger tiles, fewer step boundaries.
        return 10 << 20, 64 << 20
    # v7x (64 MiB per TensorCore) or unknown chip: stay conservative.
    return 6 << 20, 40 << 20


def _pick_batch_block(B, T, D, itemsize, target_bytes, min_steps=8):
    """Batch rows per grid step.

    Sized so one (bblk, T, D) output tile fits the per-chip VMEM budget, but
    capped so the grid keeps >= min_steps steps (pipelining + v7x megacore
    sharding).  Any B works: the ragged last block is handled by Pallas.
    """
    rows_by_vmem = max(1, target_bytes // max(1, T * D * itemsize))
    rows_by_steps = max(1, -(-B // min_steps))  # ceil(B / min_steps)
    return int(max(1, min(B, rows_by_vmem, rows_by_steps)))


def damping_layer(x, damping_param, *, pred_len, nhead, output_attention=False):
    """x: (B, 1, D), damping_param: (1, nhead). Returns ((B, pred_len, D), attn)."""
    B, one, D = x.shape
    assert one == 1, "DampingLayer expects a singleton time axis on input"
    assert D % nhead == 0
    head_dim = D // nhead
    T = pred_len

    # --- (1) Batch-independent cumulative damping factors (tiny, plain JAX) ---
    df = jax.nn.sigmoid(damping_param.astype(jnp.float32))            # (1, H)
    powers = (jnp.arange(T, dtype=jnp.float32) + 1.0)[:, None]        # (T, 1)
    cum = jnp.cumsum(df ** powers, axis=0)                            # (T, H) f32

    # Expand per-head factors to the model dim (layout plumbing) and drop to
    # the compute dtype (bf16 factors when x is bf16: half the vreg traffic
    # and half the resident VMEM; the kernel is HBM-write-bound anyway).
    cum_d = jnp.repeat(cum, head_dim, axis=1).astype(x.dtype)         # (T, D)

    # --- (2) Hot kernel: broadcast-multiply-store, parallel over batch blocks ---
    target_bytes, vmem_limit = _vmem_plan()
    bblk = _pick_batch_block(B, T, D, jnp.dtype(x.dtype).itemsize, target_bytes)
    grid = (pl.cdiv(B, bblk),)

    out = pl.pallas_call(
        scale_kernel,
        grid=grid,
        in_specs=[
            pl.BlockSpec((bblk, 1, D), lambda b: (b, 0, 0)),
            # Constant index_map: the (T, D) factors are copied into VMEM once
            # and stay resident for every grid step.
            pl.BlockSpec((T, D), lambda b: (0, 0)),
        ],
        out_specs=pl.BlockSpec((bblk, T, D), lambda b: (b, 0, 0)),
        out_shape=jax.ShapeDtypeStruct((B, T, D), x.dtype),
        compiler_params=pltpu.CompilerParams(
            dimension_semantics=("parallel",),
            vmem_limit_bytes=vmem_limit,
        ),
    )(x, cum_d)

    if output_attention:
        return out, cum
    return out, None


def damping_layer_ref(x, damping_param, *, pred_len, nhead):
    """Pure-JAX reference mirroring the PyTorch forward (dropout = identity)."""
    B, _, D = x.shape
    hd = D // nhead
    df = jax.nn.sigmoid(damping_param.astype(jnp.float32))            # (1, H)
    powers = (jnp.arange(pred_len, dtype=jnp.float32) + 1.0)[:, None]
    damping = jnp.cumsum(df ** powers, axis=0)                        # (T, H)
    xr = jnp.broadcast_to(x, (B, pred_len, D)).reshape(B, pred_len, nhead, hd)
    out = xr * damping[None, :, :, None]
    return out.reshape(B, pred_len, D).astype(x.dtype), damping


if __name__ == "__main__":
    B, D, NHEAD, PRED_LEN = 2, 32, 4, 8

    key = jax.random.PRNGKey(0)
    kx, kp = jax.random.split(key)
    x = jax.random.normal(kx, (B, 1, D), dtype=jnp.float32)
    damping_param = jax.random.normal(kp, (1, NHEAD), dtype=jnp.float32)

    fn = jax.jit(
        functools.partial(
            damping_layer, pred_len=PRED_LEN, nhead=NHEAD, output_attention=True
        )
    )
    out, attn = fn(x, damping_param)
    out = jax.block_until_ready(out)
    attn = jax.block_until_ready(attn)

    out_ref, attn_ref = damping_layer_ref(
        x, damping_param, pred_len=PRED_LEN, nhead=NHEAD
    )
    assert out.shape == (B, PRED_LEN, D)
    assert attn.shape == (PRED_LEN, NHEAD)
    assert jnp.allclose(out, out_ref, atol=1e-5, rtol=1e-5)
    assert jnp.allclose(attn, attn_ref, atol=1e-5, rtol=1e-5)

    print("KERNEL_OK")
</pallas_src>

<mosaic_0001>
module attributes {stable_mosaic.version = 11 : i64} {
  func.func @scale_kernel(%arg0: i32, %arg1: memref<1x1x32xf32, #tpu.memory_space<vmem>>, %arg2: memref<8x32xf32, #tpu.memory_space<vmem>>, %arg3: memref<1x8x32xf32, #tpu.memory_space<vmem>>) attributes {dimension_semantics = [#tpu.dimension_semantics<parallel>], iteration_bounds = array<i64: 2>, scalar_prefetch = 0 : i64, scratch_operands = 0 : i64, tpu.core_type = #tpu.core_type<tc>, window_params = [{transform_indices = @transform_0, window_bounds = array<i64: 1, 1, 32>}, {pipeline_mode = #tpu.pipeline_mode<synchronous>, transform_indices = @transform_1, window_bounds = array<i64: 8, 32>}, {transform_indices = @transform_2, window_bounds = array<i64: 1, 8, 32>}]} {
    %c0 = arith.constant 0 : index
    %c0_0 = arith.constant 0 : index
    %c0_1 = arith.constant 0 : index
    %0 = vector.load %arg1[%c0, %c0_0, %c0_1] : memref<1x1x32xf32, #tpu.memory_space<vmem>>, vector<1x1x32xf32>
    %c0_2 = arith.constant 0 : index
    %c0_3 = arith.constant 0 : index
    %1 = vector.load %arg2[%c0_2, %c0_3] : memref<8x32xf32, #tpu.memory_space<vmem>>, vector<8x32xf32>
    %2 = vector.shape_cast %1 : vector<8x32xf32> to vector<1x8x32xf32>
    %3 = vector.broadcast %0 : vector<1x1x32xf32> to vector<1x8x32xf32>
    %4 = arith.mulf %3, %2 : vector<1x8x32xf32>
    %c0_4 = arith.constant 0 : index
    %c0_5 = arith.constant 0 : index
    %c0_6 = arith.constant 0 : index
    %5 = vector.load %arg3[%c0_4, %c0_5, %c0_6] : memref<1x8x32xf32, #tpu.memory_space<vmem>>, vector<1x8x32xf32>
    tpu.vector_store %arg3[%c0_4, %c0_5, %c0_6], %4 {strides = array<i32>} : memref<1x8x32xf32, #tpu.memory_space<vmem>>, vector<1x8x32xf32>,
    return
  }
  func.func @transform_0(%arg0: i32) -> (i32, i32, i32) {
    %c0_i32 = arith.constant 0 : i32
    %c0_i32_0 = arith.constant 0 : i32
    %c0_i32_1 = arith.constant 0 : i32
    return %arg0, %c0_i32, %c0_i32_0 : i32, i32, i32
  }
  func.func @transform_1(%arg0: i32) -> (i32, i32) {
    %c0_i32 = arith.constant 0 : i32
    %c0_i32_0 = arith.constant 0 : i32
    %c0_i32_1 = arith.constant 0 : i32
    return %c0_i32, %c0_i32_0 : i32, i32
  }
  func.func @transform_2(%arg0: i32) -> (i32, i32, i32) {
    %c0_i32 = arith.constant 0 : i32
    %c0_i32_0 = arith.constant 0 : i32
    %c0_i32_1 = arith.constant 0 : i32
    return %arg0, %c0_i32, %c0_i32_0 : i32, i32, i32
  }
}

</mosaic_0001>

<bundles_post_ra>
// kernel: damping_layer.1
= control target key start
LH: loop header
LB: loop body
LE: loop exit
PB: predicated region body
PF: predicated region fallthrough
CT: control target
= control target key end

     0   :  { %7 = vsyncpa [#allocation3], 0  ;;  %s434_s0 = inlined_call_operand.vmem [shape: f32[2,1,32], index: 0, kind: input, shape index: {}]   ;;  %s435_s1 = inlined_call_operand.vmem [shape: f32[8,32], index: 1, kind: input, shape index: {}]   ;;  %s436_s2 = inlined_call_operand.hbm [shape: f32[2,8,32], index: 2, kind: output, shape index: {}]  }
   0x1   :  { %9 = vsyncpa [#allocation3 + $0x1], 0  ;;  %s344_s9 = smov 0   ;;  %s346_s10 = smov 0  }
   0x2   :  { %s348_s11 = smov 0   ;;  %s350_s12 = smov 0  }
   0x3 LB: > { %s365_s13 = sadd.s32 4294967295, %s326_s12   ;;  %s217_s14 = sadd.s32 4294967294, %s326_s12   ;;  %s326_s12 = sphi %s350_s12, %s442_s12   ;;  %s322_s11 = sphi %s348_s11, %s441_s11   ;;  %s318_s10 = sphi %s346_s10, %s440_s10   ;;  %s314_s9 = sphi %s344_s9, %s439_s9  }
   0x4   : > { %s369_s15 = sadd.s32 1, %s326_s12   ;;  %s69_s16 = sadd.s32 1, %s322_s11 }
   0x5   : > { %s66_s17 = ssub.s32 %s326_s12, %s369_s15  ;;  %p79_p0 = scmp.ne.s32.totalorder %s322_s11, %s318_s10 }
   0x6   : > { %p67_p1 = scmp.eq.s32.totalorder %s66_s17, 0  ;;  %p80_p2 = scmp.eq.s32.totalorder %s365_s13, 1 }
   0x7   : > { %p85_p3 = scmp.ne.s32.totalorder %s318_s10, %s314_s9  ;;  %p86_p4 = scmp.eq.s32.totalorder %s217_s14, 1 }
   0x8   : > { %s380_s18 = scalar_select %p67_p1, %s322_s11, %s69_s16  }
   0x9   : > { %p382_p5 = por %p80_p2, %p79_p0  ;;  %p386_p6 = por %p86_p4, %p85_p3 }
   0xa   : > { %p220_p7 = scmp.ge.s32.totalorder %s326_s12, 1  ;;  %p113_p8 = scmp.lt.s32.totalorder %s326_s12, 3 }
   0xc   : > { %p114_p9 = pnand %p220_p7, %p113_p8 }
   0xd   : > { %s130_s21 = sand.u32 (!%p114_p9), 1, %s318_s10   ;;  %p133_p10 = scmp.lt.s32.totalorder (!%p114_p9), %s365_s13, 1 }
   0xe   : > { %117 = sbr.rel (%p114_p9) target bundleno = 41 (0x29), region = 28  ;;  %s221_s22 = sshll.u32 (!%p114_p9), %s130_s21, 3 }
   0xf   : > { %s132_s26 = scalar_lea.vmem (!%p114_p9), [#allocation2], %s221_s22  ;;  %s224_s28 = sshll.u32 (!%p114_p9), %s365_s13, 7 }
  0x10   : > { %s161_s27 = sshll.u32 (!%p114_p9), %s132_s26, 4  ;;  %s159_s6 = scalar_lea.hbm (!%p114_p9), %s436_s2, %s224_s28  ;;  %s162_s27 = int_to_ptr.vmem [resolvable:$true] %s161_s27 }
  0x11   : > { %s148_s7 = scalar_lea.sflag (!%p114_p9), [#allocation3], %s130_s21  ;;  %s266_s8 = scalar_lea.vmem (!%p114_p9), %s162_s27, 128 }
  0x12   : > { %p267_p11 = scmp.ne.s32.totalorder (!%p114_p9), %s162_s27, %s266_s8 }
  0x13   : > { %s134_s23 = scalar_select %p133_p10, %s365_s13, 1  ;;  %v137_v0 = vld [vmem:[%s435_s1] sm:$0xff]  ;;  %vm145_vm0 = vcmask 261120  }
  0x14   : > { %p268_p12 = pnand %p267_p11, %p382_p5  ;;  %s328_s13 = smov [#allocation2]  }
  0x15   : > { %s135_s3 = scalar_lea.vmem %s434_s0, %s134_s23  ;;  %s270_s14 = sshll.u32 %s328_s13, 4  ;;  %s271_s14 = int_to_ptr.vmem [resolvable:$false] %s270_s14 }
  0x16   : > { %v222_v1 = vld [vmem:[%s135_s3] ss:$0 sm:$0xff]  ;;  %p269_p13 = pneg %p268_p12  ;;  %s272_s16 = scalar_lea.vmem %s271_s14, 256 }
  0x17   : > { %v144_v2 = vmul.f32 %v222_v1, %v137_v0  ;;  %p273_p0 = scmp.lt.s32.totalorder %s162_s27, %s271_s14  ;;  %p274_p1 = scmp.lt.s32.totalorder %s272_s16, %s266_s8 }
  0x19   : > { %146 = vst.msk [vmem:[%s132_s26] sm:$0xff] %vm145_vm0, %v144_v2  ;;  %p275_p2 = por %p274_p1, %p273_p0 }
  0x1b   : > { %p276_p3 = pnand %p275_p2, %p269_p13 }
  0x1d   : > { %279 = shalt.err (!%p276_p3)
}
  0x1e   : > { %s280_s17 = scalar_lea.hbm %s159_s6, 128  ;;  %s284_s23 = scalar_lea.hbm %s436_s2, 256 }
  0x1f   : > { %p281_p4 = scmp.ne.s32.totalorder %s159_s6, %s280_s17  ;;  %p285_p9 = scmp.lt.s32.totalorder %s159_s6, %s436_s2 }
  0x20   : > { %p286_p10 = scmp.lt.s32.totalorder %s284_s23, %s280_s17 }
  0x21   : > { %p282_p7 = pnand %p281_p4, %p382_p5 }
  0x22   : > { %p287_p11 = por %p286_p10, %p285_p9 }
  0x23   : > { %p283_p8 = pneg %p282_p7 }
  0x25   : > { %p288_p12 = pnand %p287_p11, %p283_p8 }
  0x27   : > { %291 = shalt.err (!%p288_p12)
}
  0x28   : > { %227 = dma.vmem_to_hbm [thread:$0]  (%p382_p5), %s162_s27, 128, %s159_s6, %s148_s7  }
  0x29 PF: > { %p233_p13 = scmp.ge.s32.totalorder %s326_s12, 2  ;;  %s173_s26 = sand.u32 1, %s314_s9  }
  0x2a   : > { %s174_s28 = scalar_lea.sflag [#allocation3], %s173_s26 }
  0x2b   : > { %p230_p0 = pnand %p233_p13, %p386_p6 }
  0x2d   : > { %p231_p1 = pneg %p230_p0 }
  0x2f   : > { %309 = dma.done.wait (%p231_p1), %s174_s28, 128  }
  0x30   : > { %311 = vsyncadd (%p231_p1), %s174_s28, 4294967168  ;;  %p12_p2 = scmp.ge.s32.totalorder %s369_s15, 4   ;;  %s439_s9 = smov %s318_s10 }
  0x31   : > { %s440_s10 = smov %s322_s11  ;;  %s441_s11 = smov %s380_s18 }
  0x32   : > { %s442_s12 = smov %s369_s15  ;;  %14 = sbr.rel (!%p12_p2) target bundleno = 3 (0x3), region = 63 }
  0x37   :  { %179 = vsyncpa [#allocation3], 1 }
  0x38   :  { %181 = vsyncpa [#allocation3 + $0x1], 1 }

</bundles_post_ra>
